<compile_context>
chip_gen: v7x
topology: tpu7x:2x2x1
jax: 0.10.0
libtpu: 0.0.40
codegen_flags: <defaults>
</compile_context>

<pallas_src>
import functools

import jax
import jax.numpy as jnp
import numpy as np
from jax.experimental import pallas as pl
from jax.experimental.pallas import tpu as pltpu


def _angular_loss_kernel(x_ref, lab_ref, out_ref, *, s, m, eps, loss_type,
                         n_valid, d_valid, tn):
    pid = pl.program_id(0)

    x = x_ref[...].astype(jnp.float32)            # (TN, Dp), cast from native dtype
    labels = lab_ref[...]                         # (TN, 1) int32 (padded rows hold -1)
    tn_blk, dp = x.shape

    # Row-wise L2 normalization (torch.nn.functional.normalize, eps=1e-12).
    # Zero-padded feature columns do not perturb the norm.
    norm = jnp.sqrt(jnp.sum(x * x, axis=-1, keepdims=True))
    xn = x / jnp.maximum(norm, 1e-12)

    # One-hot selection of the label column via a lane iota (gather-free).
    col = jax.lax.broadcasted_iota(jnp.int32, (tn_blk, dp), 1)
    is_target = col == labels                     # (TN, Dp) bool
    target = jnp.sum(jnp.where(is_target, xn, 0.0), axis=-1, keepdims=True)  # (TN, 1)

    t = jnp.clip(target, -1.0 + eps, 1.0 - eps)
    if loss_type == "arcface":
        # cos(acos(t) + m) == t*cos(m) - sqrt(1 - t^2)*sin(m)  (exact for t in [-1, 1])
        numerator = s * (t * np.cos(m) - jnp.sqrt(1.0 - t * t) * np.sin(m))
    elif loss_type == "cosface":
        numerator = s * (target - m)              # no clamp in the torch code for cosface
    else:  # sphereface
        # TODO(synk): jnp.arccos lowers via atan2; if unsupported on a given Mosaic version,
        # replace with a Chebyshev cos(m*acos(t)) expansion.
        numerator = s * jnp.cos(m * jnp.arccos(t))

    # exp(s*xn) over the full tile is the binding EUP work; the masks below are VPU filler.
    expv = jnp.exp(s * xn)
    drop = is_target
    if dp != d_valid:                             # mask lane-padded feature columns
        drop = jnp.logical_or(drop, col >= d_valid)
    excl_sum = jnp.sum(jnp.where(drop, 0.0, expv), axis=-1, keepdims=True)   # (TN, 1)

    denominator = jnp.exp(numerator) + excl_sum
    L = numerator - jnp.log(denominator)          # (TN, 1)

    # Mask rows that are pure batch padding out of the loss sum.
    row = jax.lax.broadcasted_iota(jnp.int32, (tn_blk, 1), 0) + pid * tn
    L = jnp.where(row < n_valid, L, 0.0)
    tile_sum = jnp.sum(L)

    # Lane-dense partial-sum write; reduced (and negated / averaged) in the wrapper.
    out_ref[...] = jnp.full((1, 8, 128), tile_sum, dtype=jnp.float32)


def angular_penalty_sm_loss(x, labels, *, out_features, loss_type="arcface",
                            eps=1e-7, s=None, m=None):
    """x: (N, in_features) float (any float dtype), labels: (N,) int. Returns scalar f32 loss."""
    loss_type = loss_type.lower()
    assert loss_type in ("arcface", "sphereface", "cosface")
    defaults = {"arcface": (64.0, 0.5), "sphereface": (64.0, 1.35), "cosface": (30.0, 0.4)}
    s_def, m_def = defaults[loss_type]
    s = s_def if not s else s
    m = m_def if not m else m

    n, d = x.shape

    # Lane-pad the class/feature axis to a multiple of 128 (full-lane vregs).
    d_pad = max(128, ((d + 127) // 128) * 128)

    # Row tile: biggest that keeps the f32 working tile ~<= 2 MiB so double-buffered input
    # plus in-kernel f32 temporaries stay well inside v7x's 32 MiB scoped VMEM.
    bytes_per_row_f32 = d_pad * 4
    tn = int(min(512, max(8, (2 * 1024 * 1024) // bytes_per_row_f32)))
    tn = min(tn, ((n + 7) // 8) * 8)              # don't over-pad tiny batches
    tn = max(8, (tn // 8) * 8)

    n_pad = ((n + tn - 1) // tn) * tn
    n_tiles = n_pad // tn

    # Zero-pad x (native dtype -- no f32 pre-cast: halves HBM->VMEM traffic for bf16 inputs);
    # pad labels with -1 so padded rows never match any column.
    x_p = jnp.pad(x, ((0, n_pad - n), (0, d_pad - d)))
    labels_p = jnp.pad(labels.astype(jnp.int32).reshape(n, 1),
                       ((0, n_pad - n), (0, 0)), constant_values=-1)

    kernel = functools.partial(_angular_loss_kernel, s=float(s), m=float(m),
                               eps=float(eps), loss_type=loss_type,
                               n_valid=n, d_valid=d, tn=tn)

    partials = pl.pallas_call(
        kernel,
        out_shape=jax.ShapeDtypeStruct((n_tiles, 8, 128), jnp.float32),
        grid=(n_tiles,),
        in_specs=[
            pl.BlockSpec((tn, d_pad), lambda i: (i, 0)),   # x row tile (pipelined)
            pl.BlockSpec((tn, 1), lambda i: (i, 0)),       # labels row tile
        ],
        out_specs=pl.BlockSpec((1, 8, 128), lambda i: (i, 0, 0)),
        compiler_params=pltpu.CompilerParams(
            dimension_semantics=("parallel",),             # shard rows across v7x's 2 TCs
            vmem_limit_bytes=32 * 1024 * 1024,
        ),
    )(x_p, labels_p)

    # Final mean + negation on the tiny (n_tiles,) vector of partial sums.
    return -(jnp.sum(partials[:, 0, 0]) / n)


def _reference_loss(x, labels, *, out_features, loss_type="arcface",
                    eps=1e-7, s=64.0, m=0.5):
    """Pure-JAX reference mirroring the torch forward (for a sanity check)."""
    x = x.astype(jnp.float32)
    norm = jnp.sqrt(jnp.sum(x * x, axis=-1, keepdims=True))
    xn = x / jnp.maximum(norm, 1e-12)
    n = x.shape[0]
    target = xn[jnp.arange(n), labels]
    t = jnp.clip(target, -1.0 + eps, 1.0 - eps)
    if loss_type == "arcface":
        numerator = s * jnp.cos(jnp.arccos(t) + m)
    elif loss_type == "cosface":
        numerator = s * (target - m)
    else:
        numerator = s * jnp.cos(m * jnp.arccos(t))
    mask = jax.nn.one_hot(labels, x.shape[1], dtype=jnp.float32)
    excl_sum = jnp.sum(jnp.exp(s * xn) * (1.0 - mask), axis=-1)
    L = numerator - jnp.log(jnp.exp(numerator) + excl_sum)
    return -jnp.mean(L)


if __name__ == "__main__":
    N, IN_FEATURES, OUT_FEATURES = 8, 32, 16

    key = jax.random.PRNGKey(0)
    kx, kl, kw = jax.random.split(key, 3)
    x = jax.random.normal(kx, (N, IN_FEATURES), dtype=jnp.float32)
    labels = jax.random.randint(kl, (N,), 0, OUT_FEATURES, dtype=jnp.int32)

    # NOTE: exactly like the PyTorch forward, the module's fc weight is NOT used in the loss.
    fc_weight = jax.random.normal(kw, (OUT_FEATURES, IN_FEATURES), dtype=jnp.float32) \
        * (1.0 / np.sqrt(IN_FEATURES))

    loss = angular_penalty_sm_loss(x, labels, out_features=OUT_FEATURES,
                                   loss_type="arcface")
    loss = jax.block_until_ready(loss)

    ref = _reference_loss(x, labels, out_features=OUT_FEATURES,
                          loss_type="arcface", s=64.0, m=0.5, eps=1e-7)
    ref = jax.block_until_ready(ref)

    assert np.isfinite(float(loss))
    np.testing.assert_allclose(float(loss), float(ref), rtol=2e-3, atol=1e-2)

    print("KERNEL_OK")
</pallas_src>

<mosaic_0001>
module attributes {stable_mosaic.version = 11 : i64} {
  func.func @_angular_loss_kernel(%arg0: i32, %arg1: memref<8x128xf32, #tpu.memory_space<vmem>>, %arg2: memref<8x1xi32, #tpu.memory_space<vmem>>, %arg3: memref<1x8x128xf32, #tpu.memory_space<vmem>>) attributes {dimension_semantics = [#tpu.dimension_semantics<parallel>], iteration_bounds = array<i64: 1>, scalar_prefetch = 0 : i64, scratch_operands = 0 : i64, tpu.core_type = #tpu.core_type<tc>, window_params = [{transform_indices = @transform_0, window_bounds = array<i64: 8, 128>}, {transform_indices = @transform_1, window_bounds = array<i64: 8, 1>}, {transform_indices = @transform_2, window_bounds = array<i64: 1, 8, 128>}]} {
    %c0 = arith.constant 0 : index
    %c0_0 = arith.constant 0 : index
    %0 = vector.load %arg1[%c0, %c0_0] : memref<8x128xf32, #tpu.memory_space<vmem>>, vector<8x128xf32>
    %c0_1 = arith.constant 0 : index
    %c0_2 = arith.constant 0 : index
    %1 = vector.load %arg2[%c0_1, %c0_2] : memref<8x1xi32, #tpu.memory_space<vmem>>, vector<8x1xi32>
    %2 = arith.mulf %0, %0 : vector<8x128xf32>
    %cst = arith.constant dense<0.000000e+00> : vector<8xf32>
    %3 = vector.multi_reduction <add>, %2, %cst [1] : vector<8x128xf32> to vector<8xf32>
    %4 = vector.shape_cast %3 : vector<8xf32> to vector<8x1xf32>
    %5 = math.sqrt %4 : vector<8x1xf32>
    %cst_3 = arith.constant 9.99999996E-13 : f32
    %6 = vector.broadcast %cst_3 : f32 to vector<8x1xf32>
    %7 = arith.maximumf %5, %6 : vector<8x1xf32>
    %8 = vector.broadcast %7 : vector<8x1xf32> to vector<8x128xf32>
    %9 = arith.divf %0, %8 : vector<8x128xf32>
    %10 = tpu.iota {dimensions = array<i32: 1>} : vector<8x128xi32>
    %11 = vector.broadcast %1 : vector<8x1xi32> to vector<8x128xi32>
    %12 = arith.cmpi eq, %10, %11 : vector<8x128xi32>
    %cst_4 = arith.constant 0.000000e+00 : f32
    %13 = vector.broadcast %cst_4 : f32 to vector<8x128xf32>
    %14 = arith.select %12, %9, %13 : vector<8x128xi1>, vector<8x128xf32>
    %cst_5 = arith.constant dense<0.000000e+00> : vector<8xf32>
    %15 = vector.multi_reduction <add>, %14, %cst_5 [1] : vector<8x128xf32> to vector<8xf32>
    %16 = vector.shape_cast %15 : vector<8xf32> to vector<8x1xf32>
    %cst_6 = arith.constant -0.99999988 : f32
    %cst_7 = arith.constant 0.99999988 : f32
    %17 = vector.broadcast %cst_6 : f32 to vector<8x1xf32>
    %18 = arith.maximumf %17, %16 : vector<8x1xf32>
    %19 = vector.broadcast %cst_7 : f32 to vector<8x1xf32>
    %20 = arith.minimumf %19, %18 : vector<8x1xf32>
    %cst_8 = arith.constant 0.87758255 : f32
    %21 = vector.broadcast %cst_8 : f32 to vector<8x1xf32>
    %22 = arith.mulf %20, %21 : vector<8x1xf32>
    %23 = arith.mulf %20, %20 : vector<8x1xf32>
    %cst_9 = arith.constant 1.000000e+00 : f32
    %24 = vector.broadcast %cst_9 : f32 to vector<8x1xf32>
    %25 = arith.subf %24, %23 : vector<8x1xf32>
    %26 = math.sqrt %25 : vector<8x1xf32>
    %cst_10 = arith.constant 0.47942555 : f32
    %27 = vector.broadcast %cst_10 : f32 to vector<8x1xf32>
    %28 = arith.mulf %26, %27 : vector<8x1xf32>
    %29 = arith.subf %22, %28 : vector<8x1xf32>
    %cst_11 = arith.constant 6.400000e+01 : f32
    %30 = vector.broadcast %cst_11 : f32 to vector<8x1xf32>
    %31 = arith.mulf %30, %29 : vector<8x1xf32>
    %cst_12 = arith.constant 6.400000e+01 : f32
    %32 = vector.broadcast %cst_12 : f32 to vector<8x128xf32>
    %33 = arith.mulf %32, %9 : vector<8x128xf32>
    %34 = math.exp %33 : vector<8x128xf32>
    %c32_i32 = arith.constant 32 : i32
    %35 = vector.broadcast %c32_i32 : i32 to vector<8x128xi32>
    %36 = arith.cmpi sge, %10, %35 : vector<8x128xi32>
    %37 = arith.ori %12, %36 : vector<8x128xi1>
    %cst_13 = arith.constant 0.000000e+00 : f32
    %38 = vector.broadcast %cst_13 : f32 to vector<8x128xf32>
    %39 = arith.select %37, %38, %34 : vector<8x128xi1>, vector<8x128xf32>
    %cst_14 = arith.constant dense<0.000000e+00> : vector<8xf32>
    %40 = vector.multi_reduction <add>, %39, %cst_14 [1] : vector<8x128xf32> to vector<8xf32>
    %41 = vector.shape_cast %40 : vector<8xf32> to vector<8x1xf32>
    %42 = math.exp %31 : vector<8x1xf32>
    %43 = arith.addf %42, %41 : vector<8x1xf32>
    %44 = math.log %43 : vector<8x1xf32>
    %45 = arith.subf %31, %44 : vector<8x1xf32>
    %46 = tpu.iota {dimensions = array<i32: 0>} : vector<8x1xi32>
    %c8_i32 = arith.constant 8 : i32
    %47 = arith.muli %arg0, %c8_i32 : i32
    %48 = vector.broadcast %47 : i32 to vector<8x1xi32>
    %49 = arith.addi %46, %48 : vector<8x1xi32>
    %c8_i32_15 = arith.constant 8 : i32
    %50 = vector.broadcast %c8_i32_15 : i32 to vector<8x1xi32>
    %51 = arith.cmpi slt, %49, %50 : vector<8x1xi32>
    %cst_16 = arith.constant 0.000000e+00 : f32
    %52 = vector.broadcast %cst_16 : f32 to vector<8x1xf32>
    %53 = arith.select %51, %45, %52 : vector<8x1xi1>, vector<8x1xf32>
    %54 = vector.shape_cast %53 : vector<8x1xf32> to vector<1x8x1xf32>
    %cst_17 = arith.constant dense<0.000000e+00> : vector<1xf32>
    %55 = vector.multi_reduction <add>, %54, %cst_17 [1, 2] : vector<1x8x1xf32> to vector<1xf32>
    %56 = vector.shape_cast %55 : vector<1xf32> to vector<1x1x1xf32>
    %57 = vector.extract %56[0, 0, 0] : f32 from vector<1x1x1xf32>
    %58 = vector.broadcast %57 : f32 to vector<1x8x128xf32>
    %c0_18 = arith.constant 0 : index
    %c0_19 = arith.constant 0 : index
    %c0_20 = arith.constant 0 : index
    %59 = vector.load %arg3[%c0_18, %c0_19, %c0_20] : memref<1x8x128xf32, #tpu.memory_space<vmem>>, vector<1x8x128xf32>
    tpu.vector_store %arg3[%c0_18, %c0_19, %c0_20], %58 {strides = array<i32>} : memref<1x8x128xf32, #tpu.memory_space<vmem>>, vector<1x8x128xf32>,
    return
  }
  func.func @transform_0(%arg0: i32) -> (i32, i32) {
    %c0_i32 = arith.constant 0 : i32
    %c0_i32_0 = arith.constant 0 : i32
    return %arg0, %c0_i32 : i32, i32
  }
  func.func @transform_1(%arg0: i32) -> (i32, i32) {
    %c0_i32 = arith.constant 0 : i32
    %c0_i32_0 = arith.constant 0 : i32
    return %arg0, %c0_i32 : i32, i32
  }
  func.func @transform_2(%arg0: i32) -> (i32, i32, i32) {
    %c0_i32 = arith.constant 0 : i32
    %c0_i32_0 = arith.constant 0 : i32
    %c0_i32_1 = arith.constant 0 : i32
    return %arg0, %c0_i32, %c0_i32_0 : i32, i32, i32
  }
}

</mosaic_0001>

<bundles_post_ra>
// kernel: tpu_custom_call.1
= control target key start
LH: loop header
LB: loop body
LE: loop exit
PB: predicated region body
PF: predicated region fallthrough
CT: control target
= control target key end

     0   :  { %s176_s0 = inlined_call_operand.vmem [shape: f32[8,128], index: 0, kind: input, shape index: {}]   ;;  %s177_s1 = inlined_call_operand.vmem [shape: s32[8,1], index: 1, kind: input, shape index: {}]   ;;  %s178_s2 = inlined_call_operand.hbm [shape: f32[1,8,128], index: 2, kind: output, shape index: {}]  }
   0x1   :  { %v12_v0 = vld [vmem:[%s176_s0] sm:$0xff] }
   0x2   :  { %7 = vsyncpa [#allocation3], 0  ;;  %v14_v1 = vmul.f32 %v12_v0, %v12_v0  ;;  %v141_v2 = vmov 0   ;;  %v13_v3 = vld [vmem:[%s177_s1] sm:$0xff]  ;;  %v27_v11 = vlaneseq  ;;  %vm72_vm7 = vcmask 7168   ;;  %s142_s0 = smov [#allocation2]  }
   0x3   :  { %104 = vset.pattern.permute.xlu0 %v141_v2  ;;  %s91_s1 = sshll.u32 %s142_s0, 4  ;;  %s92_s1 = int_to_ptr.vmem [resolvable:$true] %s91_s1 }
   0x4   :  { %15 = vadd.xlane.f32.xlu0 %v14_v1  ;;  %v28_v12 = vand.u32 127, %v27_v11  ;;  %s117_s14 = scalar_lea.vmem %s92_s1, 128  ;;  %p122_p1 = scmp.lt.s32.totalorder %s92_s1, %s92_s1 }
   0x5   :  { %p118_p0 = scmp.ne.s32.totalorder %s92_s1, %s117_s14  ;;  %p123_p2 = scmp.lt.s32.totalorder %s117_s14, %s117_s14 }
   0x6   :  { %vm54_vm3 = vcmp.ge.s32.totalorder %v28_v12, 32 }
   0x7   :  { %p124_p3 = por %p123_p2, %p122_p1 }
   0x9   :  { %p125_p4 = pnand %p124_p3, %p118_p0 }
  0x1a   :  { %30 = vperm.xlu0 %104, %v13_v3  }
  0x91   :  { %v16_v4 = vpop.xlane.xlu0 %15 }
  0x92   :  { %105 = vrsqrt.f32 %v16_v4  ;;  %vm19_vm0 = vcmp.eq.f32.partialorder %v16_v4, inf  ;;  %v22_v7 = vand.u32 2147483648, %v16_v4  ;;  %vm21_vm1 = vcmp.eq.f32.partialorder %v16_v4, 0.0 }
  0x99   :  { %v31_v13 = vpop.permute.xlu0 %30 }
  0x9a   :  { %vm32_vm2 = vcmp.eq.s32.totalorder %v28_v12, %v31_v13 }
  0x9b   :  { %vm55_vm4 = vmor %vm32_vm2, %vm54_vm3 }
  0x9c   :  { %v106_v5 = vpop.eup %105 }
  0x9d   :  { %v18_v6 = vmul.f32 %v106_v5, %v16_v4 }
  0x9f   :  { %v20_v8 = vsel %vm19_vm0, %v16_v4, %v18_v6 }
  0xa0   :  { %v23_v9 = vsel %vm21_vm1, %v22_v7, %v20_v8 }
  0xa1   :  { %v24_v10 = vmax.f32 %v23_v9, 1e-12 }
  0xa3   :  { %107 = vrcp.f32 %v24_v10 }
  0xad   :  { %v108_v14 = vpop.eup %107 }
  0xae   :  { %v26_v15 = vmul.f32 %v108_v14, %v12_v0 }
  0xb0   :  { %v33_v16 = vsel %vm32_vm2, %v26_v15, 0.0  ;;  %v51_v17 = vmul.f32 64.0, %v26_v15 }
  0xb1   :  { %34 = vadd.xlane.f32.xlu1 %v33_v16 }
  0xb2   :  { %v52_v18 = vmul.f32 1.442695, %v51_v17 }
  0xb4   :  { %109 = vpow2.f32 %v52_v18 }
  0xbe   :  { %v110_v19 = vpop.eup %109 }
  0xbf   :  { %v56_v20 = vsel %vm55_vm4, 0.0, %v110_v19 }
  0xc0   :  { %57 = vadd.xlane.f32.xlu1 %v56_v20 }
 0x13e   :  { %v35_v21 = vpop.xlane.xlu1 %34 }
 0x13f   :  { %v99_v22 = vclamps-f32 %v35_v21, 0.9999999 }
 0x141   :  { %v39_v23 = vmul.f32 %v99_v22, %v99_v22  ;;  %v38_v30 = vmul.f32 0.87758255, %v99_v22 }
 0x143   :  { %v40_v24 = vsub.f32 1.0, %v39_v23 }
 0x145   :  { %111 = vrsqrt.f32 %v40_v24  ;;  %vm43_vm5 = vcmp.eq.f32.partialorder %v40_v24, inf  ;;  %v46_v27 = vand.u32 2147483648, %v40_v24  ;;  %vm45_vm6 = vcmp.eq.f32.partialorder %v40_v24, 0.0 }
 0x14d   :  { %v58_v36 = vpop.xlane.xlu1 %57 }
 0x14f   :  { %v112_v25 = vpop.eup %111 }
 0x150   :  { %v42_v26 = vmul.f32 %v112_v25, %v40_v24 }
 0x152   :  { %v44_v28 = vsel %vm43_vm5, %v40_v24, %v42_v26 }
 0x153   :  { %v47_v29 = vsel %vm45_vm6, %v46_v27, %v44_v28 }
 0x154   :  { %v48_v31 = vmul.f32 0.47942555, %v47_v29 }
 0x156   :  { %v49_v32 = vsub.f32 %v38_v30, %v48_v31 }
 0x158   :  { %v50_v33 = vmul.f32 64.0, %v49_v32 }
 0x15a   :  { %v59_v34 = vmul.f32 1.442695, %v50_v33 }
 0x15c   :  { %113 = vpow2.f32 %v59_v34 }
 0x166   :  { %v114_v35 = vpop.eup %113 }
 0x167   :  { %v61_v37 = vadd.f32 %v114_v35, %v58_v36 }
 0x169   :  { %115 = vlog2.f32 %v61_v37 }
 0x173   :  { %v116_v38 = vpop.eup %115 }
 0x174   :  { %v63_v39 = vmul.f32 0.6931472, %v116_v38 }
 0x176   :  { %v64_v40 = vsub.f32 %v50_v33, %v63_v39 }
 0x178   :  { %v73_v41 = vsel %vm72_vm7, %v64_v40, 0.0 }
 0x179   :  { %74 = vadd.xlane.f32.xlu1 %v73_v41 }
 0x206   :  { %v75_v42 = vpop.xlane.xlu1 %74 }
 0x207   :  { %v76_v43 = vrot.slane %v75_v42, 4 }
 0x209   :  { %v77_v44 = vadd.f32 %v76_v43, %v75_v42 }
 0x20b   :  { %v78_v45 = vrot.slane %v77_v44, 2 }
 0x20d   :  { %v79_v46 = vadd.f32 %v78_v45, %v77_v44 }
 0x20f   :  { %v80_v47 = vrot.slane %v79_v46, 1 }
 0x211   :  { %v81_v48 = vadd.f32 %v80_v47, %v79_v46 }
 0x213   :  { %100 = vpush %v81_v48 }
 0x244   :  { %s101_s13 = spop %100 }
 0x245   :  { %v83_v49 = vstv %s101_s13 }
 0x246   :  { %84 = vst [vmem:[#allocation2] sm:$0xff] %v83_v49 }
 0x247   :  { %128 = shalt.err (!%p125_p4)
}
 0x248   :  { %s129_s17 = scalar_lea.hbm %s178_s2, 128 }
 0x249   :  { %p130_p5 = scmp.ne.s32.totalorder %s178_s2, %s129_s17  ;;  %p133_p6 = scmp.lt.u32.totalorder %s129_s17, %s178_s2 }
 0x24b   :  { %p135_p7 = pnand %p133_p6, %p130_p5 }
 0x24d   :  { %138 = shalt.err (!%p135_p7)
}
 0x24e   :  { %94 = dma.vmem_to_hbm [thread:$0]  %s92_s1, 128, %s178_s2, [#allocation3]  }
 0x24f   :  { %139 = dma.done.wait [#allocation3], 128  }
 0x250   :  { %140 = vsyncadd [#allocation3], 4294967168 }
 0x251   :  { %98 = vsyncpa [#allocation3], 1 }

</bundles_post_ra>
